<compile_context>
chip_gen: v7x
topology: tpu7x:2x2x1
jax: 0.10.0
libtpu: 0.0.40
codegen_flags: <defaults>
</compile_context>

<pallas_src>
import functools

import jax
import jax.numpy as jnp
from jax.experimental import pallas as pl
from jax.experimental.pallas import tpu as pltpu


def _round_up(v, m):
    return (v + m - 1) // m * m


def _mlp_kernel(x_ref, w1_ref, b1_ref, w2_ref, b2_ref, w3_ref, b3_ref,
                out_ref, *, act: str, matmul_bf16: bool, l3_on_mxu: bool):
    """Fused forward on one lane-dense batch tile.

    x_ref:  (1, TILE_N)   batch on lanes
    w1_ref: (h0, 1)  b1_ref: (h0, 1)
    w2_ref: (h1, h0) b2_ref: (h1, 1)
    w3_ref: (h1, 1) [sum path]  or (1, h1) [MXU path]
    b3_ref: (1, 1)
    out:    (1, TILE_N)
    """
    def activate(v):
        if act == "relu":
            return jnp.maximum(v, 0.0)
        elif act == "sig":
            # EUP-friendly sigmoid: exp and the approximate reciprocal both
            # land on the EUP slot, keeping the divide off the saturated VALU.
            e = jnp.exp(-v)
            return pl.reciprocal(1.0 + e, approx=True)
        else:
            raise ValueError(f"unknown act {act!r}")

    x = x_ref[...]                                         # (1, TILE_N)

    # Layer 1: K=1 -> broadcast outer product on the VPU (no MXU round-trip).
    h = activate(w1_ref[...] * x + b1_ref[...])            # (h0, TILE_N)

    # Layer 2: the only real contraction -> MXU, result stays lane-dense.
    w2 = w2_ref[...]
    if matmul_bf16:
        # bf16 MXU inputs cut vmatmul pushes ~3x; accumulation stays f32.
        h = h.astype(jnp.bfloat16)
    h = jnp.dot(w2, h, preferred_element_type=jnp.float32)
    h = activate(h + b2_ref[...])                          # (h1, TILE_N)

    # Layer 3: out_features=1.
    if l3_on_mxu:
        # (1, h1) @ (h1, TILE_N) on the (idle) MXU — frees VALU/XLU slots.
        y = jnp.dot(w3_ref[...], h, preferred_element_type=jnp.float32) \
            + b3_ref[...]
    else:
        # elementwise mult + sublane reduce (VPU + XLU), lane-dense result.
        y = jnp.sum(h * w3_ref[...], axis=0, keepdims=True) + b3_ref[...]
    out_ref[...] = y.astype(out_ref.dtype)                 # (1, TILE_N)


def sin_nn_forward(x, params, act="relu", tile_n=4096,
                   matmul_bf16=False, l3_on_mxu=False):
    """x: (N, 1) float32 (torch-style).  params: torch-layout weights/biases:
       w1 (h0,1) b1 (h0,1) w2 (h1,h0) b2 (h1,1) w3 (1,h1) b3 (1,1).

    tile_n: batch-lane tile size; sweep {2048, 4096, 8192} per chip.
    matmul_bf16 / l3_on_mxu: per-chip tunables (default exact-f32 path).
    """
    n = x.shape[0]
    h0 = params["w1"].shape[0]
    h1 = params["w2"].shape[0]

    # Lane-dense re-layout: batch -> lanes; tile must be a multiple of 128.
    n_lanes = _round_up(n, 128)
    tile_n = max(128, _round_up(min(tile_n, n_lanes), 128))
    # v7x megacore: keep >= 2 tiles on the "parallel" axis whenever there is
    # enough work so both TensorCores share the batch.
    if n_lanes >= 256:
        tile_n = min(tile_n, _round_up((n_lanes + 1) // 2, 128))
    padded_n = _round_up(n_lanes, tile_n)
    num_tiles = padded_n // tile_n

    # Single pad of the transposed row (no zeros+scatter pass over HBM).
    x_row = jnp.pad(x[:, 0].astype(jnp.float32), (0, padded_n - n)
                    ).reshape(1, padded_n)

    # VMEM guardrail: live (hidden, tile_n) f32 intermediates + double-buffered
    # x/out tiles + resident weights, with headroom.  Matters mainly on v7x
    # (64 MiB physical VMEM vs 128 MiB on v5e/v6e).
    itm_bytes = 4 * tile_n * (h0 + h1)
    io_bytes = 4 * tile_n * 2 * 2
    w_bytes = 4 * (2 * h0 + h1 * h0 + 2 * h1 + 1)
    vmem_limit = int(min(56 * 2**20,
                         max(32 * 2**20, 4 * itm_bytes + io_bytes + w_bytes)))

    w2_arg = params["w2"].astype(jnp.bfloat16) if matmul_bf16 else params["w2"]
    if l3_on_mxu:
        w3_arg = params["w3"]                    # (1, h1) row for the MXU dot
        w3_spec_shape = (1, h1)
    else:
        w3_arg = params["w3"].reshape(h1, 1)     # (h1, 1) column for the reduce
        w3_spec_shape = (h1, 1)

    kernel = functools.partial(_mlp_kernel, act=act,
                               matmul_bf16=matmul_bf16, l3_on_mxu=l3_on_mxu)
    resident = lambda shape: pl.BlockSpec(shape, lambda i: (0, 0))

    y_row = pl.pallas_call(
        kernel,
        out_shape=jax.ShapeDtypeStruct((1, padded_n), jnp.float32),
        grid=(num_tiles,),
        in_specs=[
            pl.BlockSpec((1, tile_n), lambda i: (0, i)),   # x tile (pipelined)
            resident((h0, 1)),                             # w1 (resident)
            resident((h0, 1)),                             # b1
            resident((h1, h0)),                            # w2
            resident((h1, 1)),                             # b2
            resident(w3_spec_shape),                       # w3
            resident((1, 1)),                              # b3
        ],
        out_specs=pl.BlockSpec((1, tile_n), lambda i: (0, i)),
        compiler_params=pltpu.CompilerParams(
            dimension_semantics=("parallel",),             # v7x: 2 TCs share batch
            vmem_limit_bytes=vmem_limit),
    )(x_row, params["w1"], params["b1"], w2_arg, params["b2"], w3_arg,
      params["b3"])

    # Undo padding + re-layout back to the torch-style (N, 1).
    # TODO(synk): for very large N, mask the ragged last tile in-kernel to
    # avoid this extra slice pass once the kernel is no longer the bottleneck.
    return y_row[0, :n].reshape(n, 1)


def init_params(key, h_units=(32, 32)):
    """Deterministic init mimicking nn.Linear's uniform(-1/sqrt(fan_in), ...).
    Weights stored in torch layout (out_features, in_features); biases as
    (out_features, 1) columns (kernel-friendly for lane broadcast)."""
    h0, h1 = h_units
    keys = jax.random.split(key, 6)

    def lin(kw, kb, fan_in, fan_out):
        bound = 1.0 / jnp.sqrt(jnp.float32(fan_in))
        w = jax.random.uniform(kw, (fan_out, fan_in), jnp.float32, -bound, bound)
        b = jax.random.uniform(kb, (fan_out, 1), jnp.float32, -bound, bound)
        return w, b

    w1, b1 = lin(keys[0], keys[1], 1, h0)       # (h0, 1), (h0, 1)
    w2, b2 = lin(keys[2], keys[3], h0, h1)      # (h1, h0), (h1, 1)
    w3, b3 = lin(keys[4], keys[5], h1, 1)       # (1, h1), (1, 1)
    return dict(w1=w1, b1=b1, w2=w2, b2=b2, w3=w3, b3=b3)


def reference_forward(x, p, act="relu"):
    """Pure-JAX reference matching the torch module semantics, x: (N, 1)."""
    a = (lambda v: jnp.maximum(v, 0.0)) if act == "relu" else jax.nn.sigmoid
    h = a(x @ p["w1"].T + p["b1"].T)            # (N, h0)
    h = a(h @ p["w2"].T + p["b2"].T)            # (N, h1)
    return h @ p["w3"].T + p["b3"].T            # (N, 1)


if __name__ == "__main__":
    key = jax.random.PRNGKey(0)
    k_param, k_x = jax.random.split(key)

    h_units = (32, 32)
    params = init_params(k_param, h_units)

    ok = True
    # Two small batch sizes: n=8 (single tile) and n=300 (ragged, multi-tile
    # path exercising the v7x >=2-tile cap).
    for n in (8, 300):
        kx = jax.random.fold_in(k_x, n)
        x = jax.random.uniform(kx, (n,), jnp.float32, -3.14, 3.14).reshape(n, 1)
        for act in ("relu", "sig"):
            y = jax.block_until_ready(sin_nn_forward(x, params, act=act))
            y_ref = reference_forward(x, params, act=act)
            # approx-reciprocal sigmoid (EUP) is slightly looser than exact f32.
            tol = 1e-5 if act == "relu" else 2e-2
            ok &= (y.shape == (n, 1))
            ok &= bool(jnp.allclose(y, y_ref, atol=tol, rtol=tol))
    assert ok

    print("KERNEL_OK")
</pallas_src>

<mosaic_0001>
module attributes {stable_mosaic.version = 11 : i64} {
  func.func @_mlp_kernel(%arg0: i32, %arg1: memref<1x128xf32, #tpu.memory_space<vmem>>, %arg2: memref<32x1xf32, #tpu.memory_space<vmem>>, %arg3: memref<32x1xf32, #tpu.memory_space<vmem>>, %arg4: memref<32x32xf32, #tpu.memory_space<vmem>>, %arg5: memref<32x1xf32, #tpu.memory_space<vmem>>, %arg6: memref<32x1xf32, #tpu.memory_space<vmem>>, %arg7: memref<1x1xf32, #tpu.memory_space<vmem>>, %arg8: memref<1x128xf32, #tpu.memory_space<vmem>>) attributes {dimension_semantics = [#tpu.dimension_semantics<parallel>], iteration_bounds = array<i64: 1>, scalar_prefetch = 0 : i64, scratch_operands = 0 : i64, tpu.core_type = #tpu.core_type<tc>, window_params = [{transform_indices = @transform_0, window_bounds = array<i64: 1, 128>}, {pipeline_mode = #tpu.pipeline_mode<synchronous>, transform_indices = @transform_1, window_bounds = array<i64: 32, 1>}, {pipeline_mode = #tpu.pipeline_mode<synchronous>, transform_indices = @transform_2, window_bounds = array<i64: 32, 1>}, {pipeline_mode = #tpu.pipeline_mode<synchronous>, transform_indices = @transform_3, window_bounds = array<i64: 32, 32>}, {pipeline_mode = #tpu.pipeline_mode<synchronous>, transform_indices = @transform_4, window_bounds = array<i64: 32, 1>}, {pipeline_mode = #tpu.pipeline_mode<synchronous>, transform_indices = @transform_5, window_bounds = array<i64: 32, 1>}, {pipeline_mode = #tpu.pipeline_mode<synchronous>, transform_indices = @transform_6, window_bounds = array<i64: 1, 1>}, {transform_indices = @transform_7, window_bounds = array<i64: 1, 128>}]} {
    %c0 = arith.constant 0 : index
    %c0_0 = arith.constant 0 : index
    %0 = vector.load %arg1[%c0, %c0_0] : memref<1x128xf32, #tpu.memory_space<vmem>>, vector<1x128xf32>
    %c0_1 = arith.constant 0 : index
    %c0_2 = arith.constant 0 : index
    %1 = vector.load %arg2[%c0_1, %c0_2] : memref<32x1xf32, #tpu.memory_space<vmem>>, vector<32x1xf32>
    %2 = vector.broadcast %1 : vector<32x1xf32> to vector<32x128xf32>
    %3 = vector.broadcast %0 : vector<1x128xf32> to vector<32x128xf32>
    %4 = arith.mulf %2, %3 : vector<32x128xf32>
    %c0_3 = arith.constant 0 : index
    %c0_4 = arith.constant 0 : index
    %5 = vector.load %arg3[%c0_3, %c0_4] : memref<32x1xf32, #tpu.memory_space<vmem>>, vector<32x1xf32>
    %6 = vector.broadcast %5 : vector<32x1xf32> to vector<32x128xf32>
    %7 = arith.addf %4, %6 : vector<32x128xf32>
    %cst = arith.constant 0.000000e+00 : f32
    %8 = vector.broadcast %cst : f32 to vector<32x128xf32>
    %9 = arith.maximumf %7, %8 : vector<32x128xf32>
    %c0_5 = arith.constant 0 : index
    %c0_6 = arith.constant 0 : index
    %10 = vector.load %arg4[%c0_5, %c0_6] : memref<32x32xf32, #tpu.memory_space<vmem>>, vector<32x32xf32>
    %cst_7 = arith.constant dense<0.000000e+00> : vector<32x128xf32>
    %11 = tpu.matmul %10, %9, %cst_7 {dimension_numbers = #tpu.dot_dimension_numbers<[1], [0], [0], [1], [0, 0, 1, 1], [], []>} : vector<32x32xf32>, vector<32x128xf32>, vector<32x128xf32> -> vector<32x128xf32>
    %c0_8 = arith.constant 0 : index
    %c0_9 = arith.constant 0 : index
    %12 = vector.load %arg5[%c0_8, %c0_9] : memref<32x1xf32, #tpu.memory_space<vmem>>, vector<32x1xf32>
    %13 = vector.broadcast %12 : vector<32x1xf32> to vector<32x128xf32>
    %14 = arith.addf %11, %13 : vector<32x128xf32>
    %cst_10 = arith.constant 0.000000e+00 : f32
    %15 = vector.broadcast %cst_10 : f32 to vector<32x128xf32>
    %16 = arith.maximumf %14, %15 : vector<32x128xf32>
    %c0_11 = arith.constant 0 : index
    %c0_12 = arith.constant 0 : index
    %17 = vector.load %arg6[%c0_11, %c0_12] : memref<32x1xf32, #tpu.memory_space<vmem>>, vector<32x1xf32>
    %18 = vector.broadcast %17 : vector<32x1xf32> to vector<32x128xf32>
    %19 = arith.mulf %16, %18 : vector<32x128xf32>
    %cst_13 = arith.constant dense<0.000000e+00> : vector<128xf32>
    %20 = vector.multi_reduction <add>, %19, %cst_13 [0] : vector<32x128xf32> to vector<128xf32>
    %21 = vector.shape_cast %20 : vector<128xf32> to vector<1x128xf32>
    %c0_14 = arith.constant 0 : index
    %c0_15 = arith.constant 0 : index
    %22 = vector.load %arg7[%c0_14, %c0_15] : memref<1x1xf32, #tpu.memory_space<vmem>>, vector<1x1xf32>
    %23 = vector.broadcast %22 : vector<1x1xf32> to vector<1x128xf32>
    %24 = arith.addf %21, %23 : vector<1x128xf32>
    %c0_16 = arith.constant 0 : index
    %c0_17 = arith.constant 0 : index
    %25 = vector.load %arg8[%c0_16, %c0_17] : memref<1x128xf32, #tpu.memory_space<vmem>>, vector<1x128xf32>
    tpu.vector_store %arg8[%c0_16, %c0_17], %24 {strides = array<i32>} : memref<1x128xf32, #tpu.memory_space<vmem>>, vector<1x128xf32>,
    return
  }
  func.func @transform_0(%arg0: i32) -> (i32, i32) {
    %c0_i32 = arith.constant 0 : i32
    %c0_i32_0 = arith.constant 0 : i32
    return %c0_i32, %arg0 : i32, i32
  }
  func.func @transform_1(%arg0: i32) -> (i32, i32) {
    %c0_i32 = arith.constant 0 : i32
    %c0_i32_0 = arith.constant 0 : i32
    %c0_i32_1 = arith.constant 0 : i32
    return %c0_i32, %c0_i32_0 : i32, i32
  }
  func.func @transform_2(%arg0: i32) -> (i32, i32) {
    %c0_i32 = arith.constant 0 : i32
    %c0_i32_0 = arith.constant 0 : i32
    %c0_i32_1 = arith.constant 0 : i32
    return %c0_i32, %c0_i32_0 : i32, i32
  }
  func.func @transform_3(%arg0: i32) -> (i32, i32) {
    %c0_i32 = arith.constant 0 : i32
    %c0_i32_0 = arith.constant 0 : i32
    %c0_i32_1 = arith.constant 0 : i32
    return %c0_i32, %c0_i32_0 : i32, i32
  }
  func.func @transform_4(%arg0: i32) -> (i32, i32) {
    %c0_i32 = arith.constant 0 : i32
    %c0_i32_0 = arith.constant 0 : i32
    %c0_i32_1 = arith.constant 0 : i32
    return %c0_i32, %c0_i32_0 : i32, i32
  }
  func.func @transform_5(%arg0: i32) -> (i32, i32) {
    %c0_i32 = arith.constant 0 : i32
    %c0_i32_0 = arith.constant 0 : i32
    %c0_i32_1 = arith.constant 0 : i32
    return %c0_i32, %c0_i32_0 : i32, i32
  }
  func.func @transform_6(%arg0: i32) -> (i32, i32) {
    %c0_i32 = arith.constant 0 : i32
    %c0_i32_0 = arith.constant 0 : i32
    %c0_i32_1 = arith.constant 0 : i32
    return %c0_i32, %c0_i32_0 : i32, i32
  }
  func.func @transform_7(%arg0: i32) -> (i32, i32) {
    %c0_i32 = arith.constant 0 : i32
    %c0_i32_0 = arith.constant 0 : i32
    return %c0_i32, %arg0 : i32, i32
  }
}

</mosaic_0001>

<bundles_post_ra>
// kernel: tpu_custom_call.1
= control target key start
LH: loop header
LB: loop body
LE: loop exit
PB: predicated region body
PF: predicated region fallthrough
CT: control target
= control target key end

     0   :  { %s480_s0 = inlined_call_operand.vmem [shape: f32[1,128], index: 0, kind: input, shape index: {}]   ;;  %s481_s1 = inlined_call_operand.vmem [shape: f32[32,1], index: 1, kind: input, shape index: {}]   ;;  %s482_s2 = inlined_call_operand.vmem [shape: f32[32,1], index: 2, kind: input, shape index: {}]   ;;  %s483_s3 = inlined_call_operand.vmem [shape: f32[32,32], index: 3, kind: input, shape index: {}]   ;;  %s484_s4 = inlined_call_operand.vmem [shape: f32[32,1], index: 4, kind: input, shape index: {}]   ;;  %s485_s5 = inlined_call_operand.vmem [shape: f32[32,1], index: 5, kind: input, shape index: {}]   ;;  %s486_s6 = inlined_call_operand.<no memory space> [shape: f32[1,1], index: 6, kind: input, shape index: {}]   ;;  %s487_s7 = inlined_call_operand.hbm [shape: f32[1,128], index: 7, kind: output, shape index: {}]  }
   0x1   :  { %v12_v0 = vstv %s486_s6 }
   0x2   :  { %13 = vst [vmem:[#allocation2] sm:$0x1] %v12_v0 }
   0x3   :  { %v64_v1 = vld [vmem:[%s482_s2] sm:$0xff]  ;;  %v356_v3 = vmov 0   ;;  %v65_v4 = vld [vmem:[%s482_s2 + $0x8] sm:$0xff] }
   0x4   :  { %v30_v2 = vld [vmem:[%s481_s1] sm:$0xff]  ;;  %331 = vset.pattern.permute.xlu1 %v356_v3  ;;  %330 = vset.pattern.permute.xlu0 %v356_v3  ;;  %v31_v5 = vld [vmem:[%s481_s1 + $0x8] sm:$0xff] }
   0x5   :  { %70 = vperm.xlu1 %331, %v64_v1   ;;  %36 = vperm.xlu0 %330, %v30_v2  }
   0x9   :  { %75 = vperm.xlu1 %331, %v65_v4   ;;  %41 = vperm.xlu0 %330, %v31_v5  }
   0xa   :  { %14 = vsyncpa [#allocation4], 0  ;;  %v33_v6 = vld [vmem:[%s481_s1 + $0x18] sm:$0xff]  ;;  %v32_v7 = vld [vmem:[%s481_s1 + $0x10] sm:$0xff]  ;;  %vm124_vm0 = vcmask 261120  }
   0xb   :  { %v67_v8 = vld [vmem:[%s482_s2 + $0x18] sm:$0xff]  ;;  %v66_v9 = vld [vmem:[%s482_s2 + $0x10] sm:$0xff]  ;;  %v101_v10 = vld [vmem:[%s484_s4 + $0x8] sm:$0xff] }
   0xc   :  { %v100_v11 = vld [vmem:[%s484_s4] sm:$0xff]  ;;  %v103_v12 = vld [vmem:[%s484_s4 + $0x18] sm:$0xff]  ;;  %v102_v13 = vld [vmem:[%s484_s4 + $0x10] sm:$0xff] }
   0xd   :  { %51 = vperm.xlu1 %331, %v33_v6   ;;  %46 = vperm.xlu0 %330, %v32_v7   ;;  %v96_v14 = vld [vmem:[%s483_s3] sm:$0xff]  ;;  %v98_v15 = vld [vmem:[%s483_s3 + $0x10] sm:$0xff]  ;;  %v227_v16 = vld [vmem:[%s485_s5 + $0x8] sm:$0xff] }
   0xe   :  { %v226_v17 = vld [vmem:[%s485_s5] sm:$0xff]  ;;  %310 = vmatprep.mubr.msk.f32.mxu0 %vm124_vm0, %v96_v14  ;;  %313 = vmatprep.mubr.msk.f32.mxu1 %vm124_vm0, %v98_v15  ;;  %v229_v18 = vld [vmem:[%s485_s5 + $0x18] sm:$0xff]  ;;  %v228_v19 = vld [vmem:[%s485_s5 + $0x10] sm:$0xff] }
   0xf   :  { %v263_v20 = vld [vmem:[#allocation2] sm:$0x1]  ;;  %v97_v44 = vld [vmem:[%s483_s3 + $0x8] sm:$0xff]  ;;  %v99_v45 = vld [vmem:[%s483_s3 + $0x18] sm:$0xff]  ;;  %s357_s3 = smov [#allocation3]  }
  0x10   :  { %v289_v21 = vld [vmem:[%s480_s0] ss:$0 sm:$0xff]  ;;  %s281_s15 = sshll.u32 %s357_s3, 4  ;;  %s282_s15 = int_to_ptr.vmem [resolvable:$true] %s281_s15 }
  0x11   :  { %85 = vperm.xlu1 %331, %v67_v8   ;;  %80 = vperm.xlu0 %330, %v66_v9   ;;  %v269_v8 = vlaneseq  ;;  %s332_s16 = scalar_lea.vmem %s282_s15, 16  ;;  %s336_s17 = scalar_lea.vmem %s282_s15, 32 }
  0x12   :  { %p333_p0 = scmp.ne.s32.totalorder %s282_s15, %s332_s16  ;;  %p337_p1 = scmp.lt.s32.totalorder %s282_s15, %s282_s15 }
  0x13   :  { %p338_p2 = scmp.lt.s32.totalorder %s336_s17, %s332_s16 }
  0x15   :  { %111 = vperm.xlu1 %331, %v101_v10   ;;  %106 = vperm.xlu0 %330, %v100_v11   ;;  %v270_v11 = vshrl.u32 %v269_v8, 7  ;;  %p339_p3 = por %p338_p2, %p337_p1 }
  0x17   :  { %v271_v14 = vsub.s32 0, %v270_v11  ;;  %p340_p4 = pnand %p339_p3, %p333_p0 }
  0x19   :  { %121 = vperm.xlu1 %331, %v103_v12   ;;  %116 = vperm.xlu0 %330, %v102_v13  }
  0x1d   :  { %237 = vperm.xlu1 %331, %v227_v16   ;;  %232 = vperm.xlu0 %330, %v226_v17  }
  0x21   :  { %247 = vperm.xlu1 %331, %v229_v18   ;;  %242 = vperm.xlu0 %330, %v228_v19  }
  0x25   :  { %266 = vperm.xlu0 %330, %v263_v20  }
  0x84   :  { %v71_v22 = vpop.permute.xlu1 %70  ;;  %v37_v23 = vpop.permute.xlu0 %36 }
  0x85   :  { %v60_v24 = vmul.f32 %v289_v21, %v37_v23 }
  0x87   :  { %v88_v27 = vadd.f32 %v71_v22, %v60_v24 }
  0x88   :  { %v76_v25 = vpop.permute.xlu1 %75  ;;  %v42_v26 = vpop.permute.xlu0 %41 }
  0x89   :  { %v61_v28 = vmul.f32 %v289_v21, %v42_v26  ;;  %v92_v32 = vmax.f32 %v88_v27, 0.0 }
  0x8b   :  { %v89_v29 = vadd.f32 %v76_v25, %v61_v28 }
  0x8c   :  { %v52_v30 = vpop.permute.xlu1 %51  ;;  %v47_v31 = vpop.permute.xlu0 %46 }
  0x8d   :  { %v93_v33 = vmax.f32 %v89_v29, 0.0  ;;  %v63_v35 = vmul.f32 %v289_v21, %v52_v30  ;;  %v62_v36 = vmul.f32 %v289_v21, %v47_v31 }
  0x8f   :  { %v316_v34 = vpack.c.bf16 %v93_v33, %v92_v32 }
  0x90   :  { %v86_v37 = vpop.permute.xlu1 %85  ;;  %v81_v38 = vpop.permute.xlu0 %80 }
  0x91   :  { %v91_v39 = vadd.f32 %v86_v37, %v63_v35  ;;  %v90_v40 = vadd.f32 %v81_v38, %v62_v36  ;;  %317 = vmatprep.subr.bf16.mxu0 %v316_v34  ;;  %324 = vmatprep.subr.bf16.mxu1 %v316_v34 }
  0x92   :  { %319 = vmatpush3.bf16.msra.mxu0 %v316_v34  ;;  %326 = vmatpush3.bf16.msra.mxu1 %v316_v34 }
  0x93   :  { %v95_v41 = vmax.f32 %v91_v39, 0.0  ;;  %v94_v42 = vmax.f32 %v90_v40, 0.0 }
  0x94   :  { %v107_v46 = vpop.permute.xlu0 %106  ;;  %v112_v47 = vpop.permute.xlu1 %111 }
  0x95   :  { %v320_v43 = vpack.c.bf16 %v95_v41, %v94_v42 }
  0x97   :  { %321 = vmatprep.subr.bf16.mxu0 %v320_v43  ;;  %325 = vmatprep.subr.bf16.mxu1 %v320_v43 }
  0x98   :  { %323 = vmatpush3.bf16.msra.mxu0 %v320_v43  ;;  %327 = vmatpush3.bf16.msra.mxu1 %v320_v43  ;;  %v117_v48 = vpop.permute.xlu0 %116  ;;  %v122_v49 = vpop.permute.xlu1 %121 }
  0x9b   :  { %311 = vmatmul.mubr.msk.f32.vlgmr.msra.gmra.mrb[0].mxu0 %vm124_vm0, %v97_v44  ;;  %314 = vmatmul.mubr.msk.f32.vlgmr.msra.gmra.mrb[0].mxu1 %vm124_vm0, %v99_v45 }
  0x9c   :  { %v233_v50 = vpop.permute.xlu0 %232  ;;  %v238_v59 = vpop.permute.xlu1 %237 }
  0xa0   :  { %v243_v2 = vpop.permute.xlu0 %242  ;;  %v248_v5 = vpop.permute.xlu1 %247 }
  0xa4   :  { %v267_v16 = vpop.permute.xlu0 %266 }
  0xa5   :  { %v272_v18 = vrot.slane %v267_v16, %v271_v14 }
 0x16e   :  { %v312_v51 = vpop.f32.mrb[0].mxu0  ;;  %v315_v52 = vpop.f32.mrb[0].mxu1 }
 0x16f   :  { %v209_v53 = vadd.f32 %v312_v51, %v112_v47  ;;  %v203_v54 = vpop.f32.mrb[1].mxu0  ;;  %v213_v55 = vpop.f32.mrb[1].mxu1  ;;  %v219_v56 = vadd.f32 %v315_v52, %v122_v49 }
 0x170   :  { %v204_v57 = vadd.f32 %v203_v54, %v107_v46  ;;  %v214_v58 = vadd.f32 %v213_v55, %v117_v48 }
 0x171   :  { %v223_v60 = vmax.f32 %v209_v53, 0.0  ;;  %v225_v0 = vmax.f32 %v219_v56, 0.0 }
 0x172   :  { %v222_v61 = vmax.f32 %v204_v57, 0.0  ;;  %v224_v62 = vmax.f32 %v214_v58, 0.0 }
 0x173   :  { %v251_v63 = vmul.f32 %v238_v59, %v223_v60  ;;  %v253_v6 = vmul.f32 %v248_v5, %v225_v0 }
 0x174   :  { %v250_v1 = vmul.f32 %v233_v50, %v222_v61  ;;  %v252_v4 = vmul.f32 %v243_v2, %v224_v62 }
 0x176   :  { %v254_v3 = vadd.f32 %v251_v63, %v250_v1 }
 0x178   :  { %v255_v7 = vadd.f32 %v254_v3, %v252_v4 }
 0x17a   :  { %v256_v9 = vadd.f32 %v255_v7, %v253_v6 }
 0x17c   :  { %v257_v10 = vrot.slane %v256_v9, 4 }
 0x17e   :  { %v258_v12 = vadd.f32 %v257_v10, %v256_v9 }
 0x180   :  { %v259_v13 = vrot.slane %v258_v12, 2 }
 0x182   :  { %v260_v15 = vadd.f32 %v259_v13, %v258_v12 }
 0x184   :  { %v261_v17 = vrot.slane %v260_v15, 1 }
 0x186   :  { %v262_v19 = vadd.f32 %v261_v17, %v260_v15 }
 0x188   :  { %v273_v20 = vadd.f32 %v272_v18, %v262_v19 }
 0x18a   :  { %274 = vst [vmem:[#allocation3] sm:$0x1] %v273_v20 }
 0x18b   :  { %343 = shalt.err (!%p340_p4)
}
 0x18c   :  { %s344_s20 = scalar_lea.hbm %s487_s7, 16 }
 0x18d   :  { %p345_p5 = scmp.ne.s32.totalorder %s487_s7, %s344_s20  ;;  %p348_p6 = scmp.lt.u32.totalorder %s344_s20, %s487_s7 }
 0x18f   :  { %p350_p7 = pnand %p348_p6, %p345_p5 }
 0x191   :  { %353 = shalt.err (!%p350_p7)
}
 0x192   :  { %284 = dma.vmem_to_hbm [thread:$0]  %s282_s15, 16, %s487_s7, [#allocation4]  }
 0x193   :  { %354 = dma.done.wait [#allocation4], 16  }
 0x194   :  { %355 = vsyncadd [#allocation4], 4294967280 }
 0x195   :  { %288 = vsyncpa [#allocation4], 1 }

</bundles_post_ra>
